<compile_context>
chip_gen: v6e
topology: v6e:2x2x1
jax: 0.10.0
libtpu: 0.0.40
codegen_flags: <defaults>
</compile_context>

<pallas_src>
import functools

import jax
import jax.numpy as jnp
from jax.experimental import pallas as pl
from jax.experimental.pallas import tpu as pltpu

_LANE_CHOICES = (1024, 512, 256, 128)   # lane-dense slab widths (multiples of 128)
_MAX_BLOCK_ROWS = 512                   # 512 * 1024 * 4B = 2 MiB per f32 array block


def _sim2mask_kernel(wb_ref, *refs, deterministic: bool):
    if deterministic:
        x_ref, hard_ref, soft_ref = refs
    else:
        x_ref, noise_ref, hard_ref, soft_ref = refs

    w = wb_ref[0]
    b = wb_ref[1]

    logits = x_ref[...].astype(jnp.float32) * w + b
    soft = jax.nn.sigmoid(logits)          # the only EUP transcendental in the kernel
    soft_ref[...] = soft.astype(soft_ref.dtype)

    if deterministic:
        # sigmoid(z) > 0.5  <=>  z > 0 ; hard store does not wait on the EUP.
        hard_ref[...] = (logits > 0.0).astype(hard_ref.dtype)
    else:
        # torch: logistic = log(u/(1-u)); hard = sigmoid((logits+logistic)/tau) > 0.5
        #   <=>  logits + log(u/(1-u)) > 0        (sign is tau-invariant)
        #   <=>  u > 1 - sigmoid(logits) = 1 - soft
        # noise_ref holds int16 bits i, uniform on [-32768, 32767]; take
        # u = (i + 32768) / 65536 (uniform on [0,1); u==0 -> hard=0, matching
        # torch's log(0) = -inf).  Then  u > 1 - soft  <=>  i > 32768 - 65536*soft.
        noise = noise_ref[...].astype(jnp.float32)
        hard_ref[...] = (noise > (32768.0 - 65536.0 * soft)).astype(hard_ref.dtype)


def sim2mask(x, *, w=1.0, b=0.0, gumbel_tau=1.0, deterministic=False, seed=0,
             hard_dtype=None):
    """Pallas implementation of Sim2Mask.forward. Returns (hard_mask, soft_mask).

    Note: gumbel_tau does not change the *forward* value of the hard mask (the
    sign of (logits + logistic)/tau is tau-invariant); in the PyTorch module it
    only scales the straight-through gradient, which has no forward equivalent.
    `hard_dtype` optionally narrows the hard-mask output (e.g. jnp.int8) to cut
    write bandwidth; default mirrors the input dtype like the PyTorch module.
    """
    del gumbel_tau
    orig_shape = x.shape
    dtype = x.dtype
    hard_dtype = dtype if hard_dtype is None else jnp.dtype(hard_dtype)

    flat = x.reshape(-1)
    n = flat.shape[0]

    # Lane-dense slab [rows, lanes]; adaptive lane width keeps any 128-multiple
    # size on the zero-copy path (reshape is a bitcast; no pad, no output slice).
    lanes = None
    for cand in _LANE_CHOICES:
        if n % cand == 0:
            lanes = cand
            break
    pad = 0
    if lanes is None:
        # TODO(synk): sizes that are not a multiple of 128 pay one jnp.pad pass
        # and two output slices; a tiny fused-XLA tail epilogue would avoid this.
        lanes = 128
        pad = (-n) % lanes
        flat = jnp.pad(flat, (0, pad))
    rows = (n + pad) // lanes
    x2 = flat.reshape(rows, lanes)

    # Block rows: <=512 (~2 MiB/f32 block, safe on v7x's 64 MiB VMEM); split
    # mid-size inputs into >=2 row-blocks so the "parallel" axis spans both v7x
    # TensorCores.  Kept a multiple of 16 (int16 noise sublane packing); small
    # inputs use a single full-extent block.
    if rows > _MAX_BLOCK_ROWS:
        block_rows = _MAX_BLOCK_ROWS
    elif rows >= 32:
        block_rows = (-(-rows // 2) + 15) // 16 * 16
    else:
        block_rows = rows
    grid = (pl.cdiv(rows, block_rows),)     # ragged final block handled by Pallas

    wb = jnp.array([w, b], dtype=jnp.float32)

    block = pl.BlockSpec((block_rows, lanes), lambda i: (i, 0))
    in_specs = [pl.BlockSpec(memory_space=pltpu.SMEM), block]   # [w, b] scalars
    inputs = [wb, x2]
    noise_bytes = 0
    if not deterministic:
        # 16-bit uniform bits (2 B/elem instead of 4 B/elem f32 uniforms),
        # generated once at the slab shape (never padded separately).  Bitcast
        # to int16 so the kernel only needs a signed 16-bit -> f32 convert.
        bits = jax.random.bits(jax.random.PRNGKey(seed), x2.shape, dtype=jnp.uint16)
        noise = jax.lax.bitcast_convert_type(bits, jnp.int16)
        in_specs.append(block)
        inputs.append(noise)
        noise_bytes = 2

    kernel = functools.partial(_sim2mask_kernel, deterministic=bool(deterministic))

    elems = rows * lanes
    bytes_accessed = elems * (x2.dtype.itemsize + jnp.dtype(dtype).itemsize
                              + jnp.dtype(hard_dtype).itemsize + noise_bytes)
    cost = pl.CostEstimate(flops=4 * elems, transcendentals=elems,
                           bytes_accessed=bytes_accessed)

    hard, soft = pl.pallas_call(
        kernel,
        grid=grid,
        out_shape=(jax.ShapeDtypeStruct(x2.shape, hard_dtype),
                   jax.ShapeDtypeStruct(x2.shape, dtype)),
        in_specs=in_specs,
        out_specs=(block, block),
        compiler_params=pltpu.CompilerParams(
            dimension_semantics=("parallel",),
            vmem_limit_bytes=32 * 1024 * 1024),
        cost_estimate=cost,
    )(*inputs)

    if pad:
        hard = hard.reshape(-1)[:n]
        soft = soft.reshape(-1)[:n]
    return hard.reshape(orig_shape), soft.reshape(orig_shape)


if __name__ == "__main__":
    key = jax.random.PRNGKey(0)
    # x: similarity map, NCHW-like small shape
    x = jax.random.normal(key, (2, 4, 16, 16), dtype=jnp.float32)

    # deterministic initialization of the (scalar) parameters, per __init__
    init_w, init_b, gumbel_tau = 1.0, 0.0, 1.0

    # stochastic (training-style) forward
    hard, soft = sim2mask(x, w=init_w, b=init_b, gumbel_tau=gumbel_tau,
                          deterministic=False, seed=0)
    jax.block_until_ready((hard, soft))

    # deterministic forward; check it matches the pure-JAX reference
    hard_d, soft_d = sim2mask(x, w=init_w, b=init_b, gumbel_tau=gumbel_tau,
                              deterministic=True)
    jax.block_until_ready((hard_d, soft_d))

    logits_ref = x * init_w + init_b
    soft_ref = jax.nn.sigmoid(logits_ref)
    hard_ref = (soft_ref > 0.5).astype(x.dtype)
    assert hard.shape == x.shape and soft.shape == x.shape
    assert jnp.allclose(soft_d, soft_ref, atol=1e-6)
    assert jnp.allclose(hard_d, hard_ref)
    # stochastic hard mask must be exactly binary, soft mask identical to reference
    assert bool(jnp.all((hard == 0.0) | (hard == 1.0)))
    assert jnp.allclose(soft, soft_ref, atol=1e-6)
    # E[hard] == E[soft]: loose statistical sanity check on the gumbel path
    assert abs(float(jnp.mean(hard)) - float(jnp.mean(soft))) < 0.1

    # second shape exercising the adaptive lane-width path (768 elems -> 256 lanes)
    x3 = jax.random.normal(jax.random.PRNGKey(1), (1, 3, 16, 16), dtype=jnp.float32)
    h3, s3 = sim2mask(x3, w=2.0, b=-0.5, deterministic=True)
    jax.block_until_ready((h3, s3))
    s3_ref = jax.nn.sigmoid(x3 * 2.0 - 0.5)
    assert jnp.allclose(s3, s3_ref, atol=1e-6)
    assert jnp.allclose(h3, (s3_ref > 0.5).astype(x3.dtype))

    print("KERNEL_OK")
</pallas_src>

<mosaic_0001>
module attributes {stable_mosaic.version = 11 : i64} {
  func.func @_sim2mask_kernel(%arg0: i32, %arg1: memref<2xf32, #tpu.memory_space<smem>>, %arg2: memref<2x1024xf32, #tpu.memory_space<vmem>>, %arg3: memref<2x1024xi16, #tpu.memory_space<vmem>>, %arg4: memref<2x1024xf32, #tpu.memory_space<vmem>>, %arg5: memref<2x1024xf32, #tpu.memory_space<vmem>>) attributes {dimension_semantics = [#tpu.dimension_semantics<parallel>], iteration_bounds = array<i64: 1>, scalar_prefetch = 0 : i64, scratch_operands = 0 : i64, tpu.core_type = #tpu.core_type<tc>, window_params = [{transform_indices = @transform_0, window_bounds = array<i64: 2>}, {transform_indices = @transform_1, window_bounds = array<i64: 2, 1024>}, {transform_indices = @transform_2, window_bounds = array<i64: 2, 1024>}, {transform_indices = @transform_3, window_bounds = array<i64: 2, 1024>}, {transform_indices = @transform_4, window_bounds = array<i64: 2, 1024>}]} {
    %c0 = arith.constant 0 : index
    %0 = memref.load %arg1[%c0] : memref<2xf32, #tpu.memory_space<smem>>
    %c1 = arith.constant 1 : index
    %1 = memref.load %arg1[%c1] : memref<2xf32, #tpu.memory_space<smem>>
    %c0_0 = arith.constant 0 : index
    %c0_1 = arith.constant 0 : index
    %2 = vector.load %arg2[%c0_0, %c0_1] : memref<2x1024xf32, #tpu.memory_space<vmem>>, vector<2x1024xf32>
    %3 = vector.broadcast %0 : f32 to vector<2x1024xf32>
    %4 = arith.mulf %2, %3 : vector<2x1024xf32>
    %5 = vector.broadcast %1 : f32 to vector<2x1024xf32>
    %6 = arith.addf %4, %5 : vector<2x1024xf32>
    %7 = arith.negf %6 : vector<2x1024xf32>
    %8 = math.exp %7 : vector<2x1024xf32>
    %cst = arith.constant 1.000000e+00 : f32
    %9 = vector.broadcast %cst : f32 to vector<2x1024xf32>
    %10 = arith.addf %9, %8 : vector<2x1024xf32>
    %11 = arith.divf %9, %10 : vector<2x1024xf32>
    %c0_2 = arith.constant 0 : index
    %c0_3 = arith.constant 0 : index
    %12 = vector.load %arg5[%c0_2, %c0_3] : memref<2x1024xf32, #tpu.memory_space<vmem>>, vector<2x1024xf32>
    tpu.vector_store %arg5[%c0_2, %c0_3], %11 {strides = array<i32>} : memref<2x1024xf32, #tpu.memory_space<vmem>>, vector<2x1024xf32>,
    %c0_4 = arith.constant 0 : index
    %c0_5 = arith.constant 0 : index
    %13 = vector.load %arg3[%c0_4, %c0_5] : memref<2x1024xi16, #tpu.memory_space<vmem>>, vector<2x1024xi16>
    %14 = arith.sitofp %13 : vector<2x1024xi16> to vector<2x1024xf32>
    %cst_6 = arith.constant 6.553600e+04 : f32
    %15 = vector.broadcast %cst_6 : f32 to vector<2x1024xf32>
    %16 = arith.mulf %15, %11 : vector<2x1024xf32>
    %cst_7 = arith.constant 3.276800e+04 : f32
    %17 = vector.broadcast %cst_7 : f32 to vector<2x1024xf32>
    %18 = arith.subf %17, %16 : vector<2x1024xf32>
    %19 = arith.cmpf ogt, %14, %18 : vector<2x1024xf32>
    %20 = arith.extui %19 : vector<2x1024xi1> to vector<2x1024xi32>
    %21 = arith.sitofp %20 : vector<2x1024xi32> to vector<2x1024xf32>
    %c0_8 = arith.constant 0 : index
    %c0_9 = arith.constant 0 : index
    %22 = vector.load %arg4[%c0_8, %c0_9] : memref<2x1024xf32, #tpu.memory_space<vmem>>, vector<2x1024xf32>
    tpu.vector_store %arg4[%c0_8, %c0_9], %21 {strides = array<i32>} : memref<2x1024xf32, #tpu.memory_space<vmem>>, vector<2x1024xf32>,
    return
  }
  func.func @transform_0(%arg0: i32) -> i32 {
    %c0_i32 = arith.constant 0 : i32
    %c0_i32_0 = arith.constant 0 : i32
    return %c0_i32 : i32
  }
  func.func @transform_1(%arg0: i32) -> (i32, i32) {
    %c0_i32 = arith.constant 0 : i32
    %c0_i32_0 = arith.constant 0 : i32
    return %arg0, %c0_i32 : i32, i32
  }
  func.func @transform_2(%arg0: i32) -> (i32, i32) {
    %c0_i32 = arith.constant 0 : i32
    %c0_i32_0 = arith.constant 0 : i32
    return %arg0, %c0_i32 : i32, i32
  }
  func.func @transform_3(%arg0: i32) -> (i32, i32) {
    %c0_i32 = arith.constant 0 : i32
    %c0_i32_0 = arith.constant 0 : i32
    return %arg0, %c0_i32 : i32, i32
  }
  func.func @transform_4(%arg0: i32) -> (i32, i32) {
    %c0_i32 = arith.constant 0 : i32
    %c0_i32_0 = arith.constant 0 : i32
    return %arg0, %c0_i32 : i32, i32
  }
}

</mosaic_0001>

<bundles_post_ra>
// kernel: tpu_custom_call.1
= control target key start
LH: loop header
LB: loop body
LE: loop exit
PB: predicated region body
PF: predicated region fallthrough
CT: control target
= control target key end

     0   :  { %10 = vsyncpa [#allocation5], 0  ;;  %s288_s0 = inlined_call_operand.hbm [shape: f32[2], index: 0, kind: input, shape index: {}]   ;;  %s289_s1 = inlined_call_operand.hbm [shape: f32[2,1024], index: 1, kind: input, shape index: {}]   ;;  %s290_s2 = inlined_call_operand.hbm [shape: s16[2,1024], index: 2, kind: input, shape index: {}]   ;;  %s291_s3 = inlined_call_operand.hbm [shape: f32[2,1024], index: 3, kind: output, shape index: {0}]   ;;  %s292_s4 = inlined_call_operand.hbm [shape: f32[2,1024], index: 4, kind: output, shape index: {1}]  }
   0x1   :  { %11 = vsyncpa [#allocation3], 0 }
   0x2   :  { %12 = vsyncpa [#allocation8], 0 }
   0x3   :  { %13 = vsyncpa [#allocation4], 0 }
   0x4   :  { %14 = vsyncpa [#allocation11], 0  ;;  %s242_s15 = smov [#allocation2]   ;;  %s243_s18 = smov [#allocation6]  }
   0x5   :  { %22 = dma.hbm_to_smem %s288_s0, 16, %s242_s15, [#allocation5]  }
   0x6   :  { %s29_s19 = sshll.u32 %s243_s18, 4  ;;  %s244_s20 = smov [#allocation7]   ;;  %s30_s19 = int_to_ptr.vmem [resolvable:$true] %s29_s19 }
   0x7   :  { %s39_s21 = sshll.u32 %s244_s20, 4  ;;  %s160_s22 = scalar_lea.vmem %s30_s19, 256  ;;  %s40_s21 = int_to_ptr.vmem [resolvable:$true] %s39_s21 }
   0x8   :  { %p161_p0 = scmp.ne.s32.totalorder %s30_s19, %s160_s22  ;;  %p165_p1 = scmp.lt.s32.totalorder %s30_s19, %s30_s19 }
   0x9   :  { %p166_p2 = scmp.lt.s32.totalorder %s160_s22, %s160_s22 }
   0xb   :  { %p167_p3 = por %p166_p2, %p165_p1 }
   0xd   :  { %p168_p4 = pnand %p167_p3, %p161_p0 }
   0xf   :  { %171 = shalt.err (!%p168_p4)
}
  0x10   :  { %32 = dma.hbm_to_vmem [thread:$0]  %s289_s1, 256, %s30_s19, [#allocation3]  }
  0x11   :  { %s180_s25 = scalar_lea.vmem %s40_s21, 128  ;;  %p185_p6 = scmp.lt.s32.totalorder %s40_s21, %s40_s21 }
  0x12   :  { %p181_p5 = scmp.ne.s32.totalorder %s40_s21, %s180_s25  ;;  %p186_p7 = scmp.lt.s32.totalorder %s180_s25, %s180_s25 }
  0x14   :  { %p187_p8 = por %p186_p7, %p185_p6 }
  0x16   :  { %p188_p9 = pnand %p187_p8, %p181_p5 }
  0x18   :  { %191 = shalt.err (!%p188_p9)
}
  0x19   :  { %42 = dma.hbm_to_vmem [thread:$0]  %s290_s2, 128, %s40_s21, [#allocation8]  }
  0x1a   :  { %232 = dma.done.wait [#allocation5], 16  }
  0x1b   :  { %233 = vsyncadd [#allocation5], 4294967280 }
  0x1c   :  { %234 = dma.done.wait [#allocation3], 256  }
  0x1d   :  { %235 = vsyncadd [#allocation3], 4294967040 }
  0x1e   :  { %236 = dma.done.wait [#allocation8], 128  }
  0x1f   :  { %237 = vsyncadd [#allocation8], 4294967168 }
  0x20   :  { %52 = sfence }
  0x21   :  { %s53_s1 = sld [smem:[#allocation2]]  ;;  %v55_v0 = vld [vmem:[#allocation6] sm:$0xff]  ;;  %v56_v1 = vld [vmem:[#allocation6 + $0x8] sm:$0xff]  ;;  %v77_v14 = vld [vmem:[#allocation7] sm:$0xff]  ;;  %s245_s2 = smov [#allocation10]  }
  0x22   :  { %s125_s27 = sld [smem:[#allocation2 + $0x1]]  ;;  %v78_v15 = vunpack.c.l.b16 %v77_v14  ;;  %s110_s28 = sshll.u32 %s245_s2, 4  ;;  %v79_v16 = vunpack.c.h.b16 %v77_v14  ;;  %s111_s28 = int_to_ptr.vmem [resolvable:$true] %s110_s28 }
  0x23   :  { %s246_s29 = smov [#allocation9]   ;;  %s192_s5 = scalar_lea.vmem %s111_s28, 256 }
  0x24   :  { %v80_v19 = vcvt.s32.f32 %v78_v15  ;;  %v81_v21 = vcvt.s32.f32 %v79_v16  ;;  %s100_s30 = sshll.u32 %s246_s29, 4  ;;  %p193_p10 = scmp.ne.s32.totalorder %s111_s28, %s192_s5  ;;  %s101_s30 = int_to_ptr.vmem [resolvable:$true] %s100_s30 }
  0x25   :  { %p197_p11 = scmp.lt.s32.totalorder %s111_s28, %s111_s28  ;;  %p198_p12 = scmp.lt.s32.totalorder %s192_s5, %s192_s5 }
  0x27   :  { %v57_v2 = vstv %s53_s1  ;;  %p199_p13 = por %p198_p12, %p197_p11 }
  0x28   :  { %v58_v3 = vmul.f32 %v57_v2, %v55_v0  ;;  %v60_v4 = vstv %s125_s27  ;;  %v59_v5 = vmul.f32 %v57_v2, %v56_v1 }
  0x29   :  { %p200_p0 = pnand %p199_p13, %p193_p10 }
  0x2a   :  { %v61_v6 = vadd.f32 %v60_v4, %v58_v3  ;;  %v62_v7 = vadd.f32 %v60_v4, %v59_v5 }
  0x2c   :  { %v126_v8 = vmul.f32 -1.442695, %v61_v6  ;;  %v127_v9 = vmul.f32 -1.442695, %v62_v7 }
  0x2e   :  { %136 = vpow2.f32 %v126_v8 }
  0x2f   :  { %138 = vpow2.f32 %v127_v9 }
  0x3b   :  { %v137_v10 = vpop.eup %136 }
  0x3c   :  { %v139_v11 = vpop.eup %138  ;;  %v69_v12 = vadd.f32 1.0, %v137_v10 }
  0x3d   :  { %v70_v13 = vadd.f32 1.0, %v139_v11 }
  0x3e   :  { %140 = vrcp.f32 %v69_v12 }
  0x3f   :  { %142 = vrcp.f32 %v70_v13 }
  0x4b   :  { %v141_v17 = vpop.eup %140 }
  0x4c   :  { %v143_v18 = vpop.eup %142  ;;  %75 = vst [vmem:[#allocation10] sm:$0xff] %v141_v17  ;;  %v82_v20 = vmul.f32 65536.0, %v141_v17 }
  0x4d   :  { %76 = vst [vmem:[#allocation10 + $0x8] sm:$0xff] %v143_v18  ;;  %v83_v22 = vmul.f32 65536.0, %v143_v18 }
  0x4e   :  { %v84_v23 = vsub.f32 32768.0, %v82_v20 }
  0x4f   :  { %203 = shalt.err (!%p200_p0)
}
  0x50   :  { %113 = dma.vmem_to_hbm [thread:$0]  %s111_s28, 256, %s292_s4, [#allocation11]   ;;  %v85_v24 = vsub.f32 32768.0, %v83_v22  ;;  %vm86_vm0 = vcmp.gt.f32.partialorder %v80_v19, %v84_v23  ;;  %v247_v25 = vmov 0.0  }
  0x51   :  { %v128_v26 = vsel %vm86_vm0, 1.0, %v247_v25  ;;  %s212_s8 = scalar_lea.vmem %s101_s30, 256  ;;  %p217_p2 = scmp.lt.s32.totalorder %s101_s30, %s101_s30 }
  0x52   :  { %vm87_vm1 = vcmp.gt.f32.partialorder %v81_v21, %v85_v24  ;;  %92 = vst [vmem:[#allocation9] sm:$0xff] %v128_v26  ;;  %p213_p1 = scmp.ne.s32.totalorder %s101_s30, %s212_s8  ;;  %p218_p3 = scmp.lt.s32.totalorder %s212_s8, %s212_s8 }
  0x53   :  { %v129_v27 = vsel %vm87_vm1, 1.0, %v247_v25 }
  0x54   :  { %93 = vst [vmem:[#allocation9 + $0x8] sm:$0xff] %v129_v27  ;;  %p219_p4 = por %p218_p3, %p217_p2 }
  0x56   :  { %p220_p5 = pnand %p219_p4, %p213_p1 }
  0x58   :  { %223 = shalt.err (!%p220_p5)
}
  0x59   :  { %103 = dma.vmem_to_hbm [thread:$0]  %s101_s30, 256, %s291_s3, [#allocation4]  }
  0x5a   :  { %238 = dma.done.wait [#allocation4], 256  }
  0x5b   :  { %239 = vsyncadd [#allocation4], 4294967040 }
  0x5c   :  { %240 = dma.done.wait [#allocation11], 256  }
  0x5d   :  { %241 = vsyncadd [#allocation11], 4294967040 }
  0x5e   :  { %120 = vsyncpa [#allocation3], 1 }
  0x5f   :  { %121 = vsyncpa [#allocation8], 1 }
  0x60   :  { %122 = vsyncpa [#allocation4], 1 }
  0x61   :  { %123 = vsyncpa [#allocation11], 1 }
  0x62   :  { %124 = vsyncpa [#allocation5], 1 }

</bundles_post_ra>
